<compile_context>
chip_gen: v6e
topology: v6e:2x2x1
jax: 0.10.0
libtpu: 0.0.40
codegen_flags: <defaults>
</compile_context>

<pallas_src>
import jax
import jax.numpy as jnp
from jax.experimental import pallas as pl
from jax.experimental.pallas import tpu as pltpu


def _round_up(v: int, m: int) -> int:
    return ((v + m - 1) // m) * m


# ---------------------------------------------------------------------------
# Primary path: direct HBM -> HBM strided DMA copy (no VMEM round-trip).
# ---------------------------------------------------------------------------
def _make_hbm_dma_kernel(row_chunks, l_out):
    """row_chunks: static list of (row_start, row_count) Python ints."""

    def kernel(x_hbm, o_hbm, sem):
        # The chomped tail (columns >= l_out) is simply never read: the DMAs
        # below are the only memory traffic this kernel performs.
        copies = []
        for k, (r0, rsz) in enumerate(row_chunks):
            cp = pltpu.make_async_copy(
                x_hbm.at[pl.ds(r0, rsz), pl.ds(0, l_out)],   # strided source (row stride L)
                o_hbm.at[pl.ds(r0, rsz), pl.ds(0, l_out)],   # contiguous destination
                sem.at[k],
            )
            cp.start()
            copies.append(cp)
        for cp in copies:
            cp.wait()

    return kernel


def _chomp1d_hbm_dma(x, chomp_size, *, max_chunks=8, min_chunk_bytes=512 * 1024):
    n, c, l = x.shape
    l_out = l - chomp_size
    rows = n * c
    itemsize = jnp.dtype(x.dtype).itemsize
    out_bytes = rows * l_out * itemsize

    # 4-8 concurrent DMA descriptors for large arrays; fewer when the whole
    # tensor is tiny (no point paying per-descriptor overhead).
    n_chunks = max(1, min(max_chunks, rows, pl.cdiv(out_bytes, min_chunk_bytes)))
    base, rem = divmod(rows, n_chunks)
    row_chunks = []
    r0 = 0
    for k in range(n_chunks):
        rsz = base + (1 if k < rem else 0)
        row_chunks.append((r0, rsz))
        r0 += rsz

    x2 = x.reshape(rows, l)   # free: row-major (N, C, L) -> (N*C, L)

    out2 = pl.pallas_call(
        _make_hbm_dma_kernel(row_chunks, l_out),
        out_shape=jax.ShapeDtypeStruct((rows, l_out), x.dtype),
        in_specs=[pl.BlockSpec(memory_space=pl.ANY)],
        out_specs=pl.BlockSpec(memory_space=pl.ANY),
        scratch_shapes=[pltpu.SemaphoreType.DMA((len(row_chunks),))],
        cost_estimate=pl.CostEstimate(
            flops=0, transcendentals=0, bytes_accessed=2 * out_bytes),
    )(x2)
    return out2.reshape(n, c, l_out)


# ---------------------------------------------------------------------------
# Fallback path: BlockSpec-pipelined whole-tile copy, byte-budgeted tiles.
# ---------------------------------------------------------------------------
def _chomp_copy_kernel(x_ref, o_ref):
    # Crop already happened in the input BlockSpec: whole-tile copy only.
    # NOTE: edge tiles over-read past l_out (masked on output writeback); do
    # NOT add cross-lane work (reductions/cumsums) to this body.
    o_ref[...] = x_ref[...]


def _chomp1d_pipelined(x, chomp_size, *, tile_bytes=4 << 20):
    n, c, l = x.shape
    l_out = l - chomp_size
    rows = n * c
    itemsize = jnp.dtype(x.dtype).itemsize

    # (8,128)-aligned tiles sized by a ~4 MiB byte budget (dtype-aware), so
    # bf16/int8 get proportionally larger element tiles.
    sub_mult = 8 * max(1, 4 // itemsize)          # 8 f32, 16 bf16, 32 i8
    l_t = min(_round_up(l_out, 128), 2048)
    r_budget = max(sub_mult, (tile_bytes // (l_t * itemsize)) // sub_mult * sub_mult)
    r_t = min(_round_up(rows, sub_mult), r_budget)

    # v7x: ensure a large problem yields >= 2 blocks along a parallel axis so
    # both TensorCores' DMA queues drive the shared HBM.
    if rows * l_out * itemsize > (8 << 20) and rows > sub_mult:
        r_t = min(r_t, _round_up(pl.cdiv(rows, 2), sub_mult))

    grid = (pl.cdiv(rows, r_t), pl.cdiv(l_out, l_t))   # L innermost: streams
    x2 = x.reshape(rows, l)                            # contiguous HBM per row block

    tile_b = r_t * l_t * itemsize
    out2 = pl.pallas_call(
        _chomp_copy_kernel,
        out_shape=jax.ShapeDtypeStruct((rows, l_out), x.dtype),
        grid=grid,
        # Same block index for input and output: the chomped tail is never
        # DMA'd from HBM; any over-read of a partial edge tile lands in output
        # lanes >= l_out, which Pallas discards on writeback.
        in_specs=[pl.BlockSpec((r_t, l_t), lambda i, j: (i, j))],
        out_specs=pl.BlockSpec((r_t, l_t), lambda i, j: (i, j)),
        compiler_params=pltpu.CompilerParams(
            dimension_semantics=("parallel", "parallel"),
            # double-buffered in + out (~4x tile) plus headroom
            vmem_limit_bytes=min(max(16 << 20, 4 * tile_b + (4 << 20)), 48 << 20),
        ),
        cost_estimate=pl.CostEstimate(
            flops=0, transcendentals=0,
            bytes_accessed=2 * rows * l_out * itemsize),
    )(x2)
    return out2.reshape(n, c, l_out)


# ---------------------------------------------------------------------------
# Public wrapper.
# ---------------------------------------------------------------------------
def chomp1d(x: jax.Array, chomp_size: int, *, max_chunks: int = 8,
            min_chunk_bytes: int = 512 * 1024) -> jax.Array:
    """Pallas Chomp1d: crop `chomp_size` trailing timesteps of (N, C, L)."""
    # PyTorch's Chomp1d(0) would return an empty tensor (x[..., :-0]); we
    # intentionally reject chomp_size == 0 instead of reproducing that.
    assert chomp_size > 0, "chomp_size must be positive"
    n, c, l = x.shape
    assert l - chomp_size > 0, "chomp_size must be < L"

    try:
        out = _chomp1d_hbm_dma(x, chomp_size, max_chunks=max_chunks,
                               min_chunk_bytes=min_chunk_bytes)
        # Block so any lowering/runtime issue of the direct-DMA path triggers
        # the fallback (standalone-script robustness only).
        return jax.block_until_ready(out)
    except Exception:  # pragma: no cover - toolchain-dependent fallback
        return _chomp1d_pipelined(x, chomp_size)


if __name__ == "__main__":
    key = jax.random.PRNGKey(0)

    # Primary small check: matches the module's typical usage (N, C, L).
    chomp_size = 3
    N, C, L = 2, 4, 16
    x = jax.random.normal(key, (N, C, L), dtype=jnp.float32)
    out = jax.block_until_ready(chomp1d(x, chomp_size))
    ref = x[:, :, :-chomp_size]
    assert out.shape == (N, C, L - chomp_size), out.shape
    assert jnp.array_equal(out, ref), "mismatch vs reference slice (small case)"

    # Force several concurrent HBM->HBM DMA chunks (multi-descriptor path).
    key2 = jax.random.PRNGKey(1)
    x2 = jax.random.normal(key2, (2, 4, 300), dtype=jnp.float32)
    out2 = jax.block_until_ready(chomp1d(x2, 5, min_chunk_bytes=256))
    ref2 = x2[:, :, :-5]
    assert out2.shape == ref2.shape, out2.shape
    assert jnp.array_equal(out2, ref2), "mismatch (multi-chunk DMA case)"

    # Also exercise the byte-budgeted pipelined fallback path directly.
    out3 = jax.block_until_ready(_chomp1d_pipelined(x2, 5))
    assert jnp.array_equal(out3, ref2), "mismatch (pipelined fallback)"

    print("KERNEL_OK")
</pallas_src>

<mosaic_0001>
module attributes {stable_mosaic.version = 11 : i64} {
  func.func @kernel(%arg0: memref<8x16xf32, #tpu.memory_space<any>>, %arg1: memref<8x13xf32, #tpu.memory_space<any>>, %arg2: memref<1x!tpu.dma_semaphore, #tpu.memory_space<semaphore_mem>>) attributes {dimension_semantics = [], scalar_prefetch = 0 : i64, scratch_operands = 1 : i64, tpu.core_type = #tpu.core_type<tc>} {
    %c0_i32 = arith.constant 0 : i32
    %c0_i32_0 = arith.constant 0 : i32
    %c0_i32_1 = arith.constant 0 : i32
    %0 = tpu.memref_slice %arg0[%c0_i32_0, %c0_i32_1] : memref<8x16xf32, #tpu.memory_space<any>> -> memref<8x13xf32, #tpu.memory_space<any>>
    %c0_i32_2 = arith.constant 0 : i32
    %c0_i32_3 = arith.constant 0 : i32
    %1 = tpu.memref_slice %arg1[%c0_i32_2, %c0_i32_3] : memref<8x13xf32, #tpu.memory_space<any>> -> memref<8x13xf32, #tpu.memory_space<any>>
    %2 = tpu.memref_slice %arg2[%c0_i32] : memref<1x!tpu.dma_semaphore, #tpu.memory_space<semaphore_mem>> -> memref<1x!tpu.dma_semaphore, #tpu.memory_space<semaphore_mem>>
    %3 = tpu.memref_squeeze %2 : memref<1x!tpu.dma_semaphore, #tpu.memory_space<semaphore_mem>> -> memref<!tpu.dma_semaphore, #tpu.memory_space<semaphore_mem>>
    tpu.enqueue_dma source(%0 : memref<8x13xf32, #tpu.memory_space<any>>) target(%1 : memref<8x13xf32, #tpu.memory_space<any>>) target_semaphore(%3 : memref<!tpu.dma_semaphore, #tpu.memory_space<semaphore_mem>>)
    %c0_i32_4 = arith.constant 0 : i32
    %c0_i32_5 = arith.constant 0 : i32
    %c0_i32_6 = arith.constant 0 : i32
    %4 = tpu.memref_slice %arg0[%c0_i32_5, %c0_i32_6] : memref<8x16xf32, #tpu.memory_space<any>> -> memref<8x13xf32, #tpu.memory_space<any>>
    %c0_i32_7 = arith.constant 0 : i32
    %c0_i32_8 = arith.constant 0 : i32
    %5 = tpu.memref_slice %arg1[%c0_i32_7, %c0_i32_8] : memref<8x13xf32, #tpu.memory_space<any>> -> memref<8x13xf32, #tpu.memory_space<any>>
    %6 = tpu.memref_slice %arg2[%c0_i32_4] : memref<1x!tpu.dma_semaphore, #tpu.memory_space<semaphore_mem>> -> memref<1x!tpu.dma_semaphore, #tpu.memory_space<semaphore_mem>>
    %7 = tpu.memref_squeeze %6 : memref<1x!tpu.dma_semaphore, #tpu.memory_space<semaphore_mem>> -> memref<!tpu.dma_semaphore, #tpu.memory_space<semaphore_mem>>
    tpu.wait_dma2 semaphore(%7 : memref<!tpu.dma_semaphore, #tpu.memory_space<semaphore_mem>>) src(%4 : memref<8x13xf32, #tpu.memory_space<any>>) dst(%5 : memref<8x13xf32, #tpu.memory_space<any>>)
    return
  }
}

module attributes {stable_mosaic.version = 11 : i64} {
  func.func @_chomp_copy_kernel(%arg0: i32, %arg1: i32, %arg2: memref<8x128xf32, #tpu.memory_space<vmem>>, %arg3: memref<8x128xf32, #tpu.memory_space<vmem>>) attributes {dimension_semantics = [#tpu.dimension_semantics<parallel>, #tpu.dimension_semantics<parallel>], iteration_bounds = array<i64: 1, 1>, scalar_prefetch = 0 : i64, scratch_operands = 0 : i64, tpu.core_type = #tpu.core_type<tc>, window_params = [{transform_indices = @transform_0, window_bounds = array<i64: 8, 128>}, {transform_indices = @transform_1, window_bounds = array<i64: 8, 128>}]} {
    %c0 = arith.constant 0 : index
    %c0_0 = arith.constant 0 : index
    %0 = vector.load %arg2[%c0, %c0_0] : memref<8x128xf32, #tpu.memory_space<vmem>>, vector<8x128xf32>
    %c0_1 = arith.constant 0 : index
    %c0_2 = arith.constant 0 : index
    %1 = vector.load %arg3[%c0_1, %c0_2] : memref<8x128xf32, #tpu.memory_space<vmem>>, vector<8x128xf32>
    tpu.vector_store %arg3[%c0_1, %c0_2], %0 {strides = array<i32>} : memref<8x128xf32, #tpu.memory_space<vmem>>, vector<8x128xf32>,
    return
  }
  func.func @transform_0(%arg0: i32, %arg1: i32) -> (i32, i32) {
    %c0_i32 = arith.constant 0 : i32
    return %arg0, %arg1 : i32, i32
  }
  func.func @transform_1(%arg0: i32, %arg1: i32) -> (i32, i32) {
    %c0_i32 = arith.constant 0 : i32
    return %arg0, %arg1 : i32, i32
  }
}

</mosaic_0001>

<bundles_post_ra>
// kernel: tpu_custom_call.1
= control target key start
LH: loop header
LB: loop body
LE: loop exit
PB: predicated region body
PF: predicated region fallthrough
CT: control target
= control target key end

     0   :  { %6 = vsyncpa [#allocation3], 0  ;;  %s102_s0 = inlined_call_operand.hbm [shape: f32[8,16], index: 0, kind: input, shape index: {}]   ;;  %s103_s1 = inlined_call_operand.hbm [shape: f32[8,13], index: 1, kind: output, shape index: {}]  }
   0x1   :  { %7 = vsyncpa [#allocation4], 0  ;;  %s84_s6 = smov [#allocation2]  }
   0x2   :  { %s14_s7 = sshll.u32 %s84_s6, 4  ;;  %s15_s7 = int_to_ptr.vmem [resolvable:$true] %s14_s7 }
   0x3   :  { %s48_s8 = scalar_lea.vmem %s15_s7, 128  ;;  %p53_p1 = scmp.lt.s32.totalorder %s15_s7, %s15_s7 }
   0x4   :  { %p49_p0 = scmp.ne.s32.totalorder %s15_s7, %s48_s8  ;;  %p54_p2 = scmp.lt.s32.totalorder %s48_s8, %s48_s8 }
   0x6   :  { %p55_p3 = por %p54_p2, %p53_p1 }
   0x8   :  { %p56_p4 = pnand %p55_p3, %p49_p0 }
   0xa   :  { %59 = shalt.err (!%p56_p4)
}
   0xb   :  { %17 = dma.hbm_to_vmem [thread:$0]  %s102_s0, 128, %s15_s7, [#allocation3]  }
   0xc   :  { %80 = dma.done.wait [#allocation3], 128  }
   0xd   :  { %81 = vsyncadd [#allocation3], 4294967168  ;;  %s85_s11 = smov [#allocation5]   ;;  %v21_v0 = vld [vmem:[#allocation2] sm:$0xff] }
   0xe   :  { %s29_s12 = sshll.u32 %s85_s11, 4  ;;  %22 = vst [vmem:[#allocation5] sm:$0xff] %v21_v0  ;;  %s30_s12 = int_to_ptr.vmem [resolvable:$true] %s29_s12 }
   0xf   :  { %s60_s13 = scalar_lea.vmem %s30_s12, 128  ;;  %p65_p6 = scmp.lt.s32.totalorder %s30_s12, %s30_s12 }
  0x10   :  { %p61_p5 = scmp.ne.s32.totalorder %s30_s12, %s60_s13  ;;  %p66_p7 = scmp.lt.s32.totalorder %s60_s13, %s60_s13 }
  0x12   :  { %p67_p8 = por %p66_p7, %p65_p6 }
  0x14   :  { %p68_p9 = pnand %p67_p8, %p61_p5 }
  0x16   :  { %71 = shalt.err (!%p68_p9)
}
  0x17   :  { %32 = dma.vmem_to_hbm [thread:$0]  %s30_s12, 128, %s103_s1, [#allocation4]  }
  0x18   :  { %82 = dma.done.wait [#allocation4], 128  }
  0x19   :  { %83 = vsyncadd [#allocation4], 4294967168 }
  0x1a   :  { %36 = vsyncpa [#allocation3], 1 }
  0x1b   :  { %37 = vsyncpa [#allocation4], 1 }

</bundles_post_ra>
